<compile_context>
chip_gen: v7x
topology: tpu7x:2x2x1
jax: 0.10.0
libtpu: 0.0.40
codegen_flags: <defaults>
</compile_context>

<pallas_src>
import functools
import math

import jax
import jax.numpy as jnp
from jax.experimental import pallas as pl
from jax.experimental.pallas import tpu as pltpu


# ----------------------------------------------------------------------------
# helpers
# ----------------------------------------------------------------------------
def _round_up(x, m):
    return ((x + m - 1) // m) * m


def _pad2(a, rows, cols):
    r, c = a.shape
    if r == rows and c == cols:
        return a
    return jnp.pad(a, ((0, rows - r), (0, cols - c)))


def _tpu_vmem_bytes():
    try:
        info = pltpu.get_tpu_info()
        for attr in ("vmem_capacity_bytes", "vmem_size_bytes", "vmem_bytes"):
            v = getattr(info, attr, None)
            if v:
                return int(v)
    except Exception:
        pass
    return 64 * 1024 * 1024  # conservative default (v7x-sized)


_VMEM_BYTES = _tpu_vmem_bytes()
_BIG_VMEM = _VMEM_BYTES >= 100 * 1024 * 1024      # v5e / v6e (128 MiB physical)
_LIN_TM = 512 if _BIG_VMEM else 256
_LIN_TN = 1024 if _BIG_VMEM else 512
_LIN_TK = 512
_VMEM_LIMIT = (64 if _BIG_VMEM else 48) * 1024 * 1024


def _pick_tile(dim_padded, desired):
    """Largest multiple of 128 <= desired dividing dim_padded (a 128-multiple)."""
    t = min(desired, dim_padded)
    while dim_padded % t:
        t -= 128
    return t


# ----------------------------------------------------------------------------
# Pallas kernels
# ----------------------------------------------------------------------------
def _matmul_kernel(x_ref, w_ref, b_ref, o_ref, acc_ref, *, activation):
    """One (tm, tn) output tile; accumulate over the K grid axis in f32 scratch."""
    @pl.when(pl.program_id(2) == 0)
    def _():
        acc_ref[...] = jnp.zeros_like(acc_ref)

    acc_ref[...] += jnp.dot(x_ref[...], w_ref[...],
                            preferred_element_type=jnp.float32)

    @pl.when(pl.program_id(2) == pl.num_programs(2) - 1)
    def _():
        y = acc_ref[...] + b_ref[...]
        if activation == "relu":
            y = jnp.maximum(y, 0.0)
        o_ref[...] = y.astype(o_ref.dtype)


def linear(x, p, activation=None, out_dtype=jnp.bfloat16):
    """x: (M, K).  p: {'w': bf16 (Kp, Np) pre-padded, 'b': f32 (1, Np), 'k', 'n'}.
    Returns (M, N) in out_dtype (bf16 for intermediates, f32 for logits)."""
    M, K = x.shape
    Kp, Np = p["w"].shape
    assert K == p["k"]

    tm = min(_LIN_TM, _round_up(M, 8))
    tn = _pick_tile(Np, _LIN_TN)
    tk = _pick_tile(Kp, _LIN_TK)
    Mp = _round_up(M, tm)

    xp = _pad2(x.astype(jnp.bfloat16), Mp, Kp)

    out = pl.pallas_call(
        functools.partial(_matmul_kernel, activation=activation),
        out_shape=jax.ShapeDtypeStruct((Mp, Np), out_dtype),
        grid=(Mp // tm, Np // tn, Kp // tk),
        in_specs=[
            pl.BlockSpec((tm, tk), lambda i, j, k: (i, k)),
            # TODO(synk): pipeline_mode=pl.Buffered(3) on the weight spec would deepen
            # W prefetch for the weight-streaming (small-M) regime.
            pl.BlockSpec((tk, tn), lambda i, j, k: (k, j)),
            pl.BlockSpec((1, tn), lambda i, j, k: (0, j)),
        ],
        out_specs=pl.BlockSpec((tm, tn), lambda i, j, k: (i, j)),
        scratch_shapes=[pltpu.VMEM((tm, tn), jnp.float32)],
        compiler_params=pltpu.CompilerParams(
            dimension_semantics=("parallel", "parallel", "arbitrary"),
            vmem_limit_bytes=_VMEM_LIMIT),
    )(xp, p["w"], p["b"])
    return out[:M, :p["n"]]


def _matmul_add_ln_kernel(x_ref, w_ref, b_ref, r_ref, g_ref, bt_ref, o_ref,
                          acc_ref, *, n_valid, n_padded, eps):
    """out = LayerNorm(residual + x @ w + b), LN fused into the matmul epilogue."""
    @pl.when(pl.program_id(1) == 0)
    def _():
        acc_ref[...] = jnp.zeros_like(acc_ref)

    acc_ref[...] += jnp.dot(x_ref[...], w_ref[...],
                            preferred_element_type=jnp.float32)

    @pl.when(pl.program_id(1) == pl.num_programs(1) - 1)
    def _():
        z = acc_ref[...] + b_ref[...] + r_ref[...].astype(jnp.float32)
        if n_valid == n_padded:
            mean = jnp.mean(z, axis=-1, keepdims=True)
            var = jnp.mean(jnp.square(z - mean), axis=-1, keepdims=True)
        else:
            # padded lanes hold zeros; exclude them from the statistics
            mask = (jax.lax.broadcasted_iota(jnp.int32, z.shape, 1)
                    < n_valid).astype(jnp.float32)
            inv_n = 1.0 / n_valid
            mean = jnp.sum(z * mask, axis=-1, keepdims=True) * inv_n
            var = jnp.sum(jnp.square(z - mean) * mask, axis=-1,
                          keepdims=True) * inv_n
        zn = (z - mean) * jax.lax.rsqrt(var + eps)
        o_ref[...] = (zn * g_ref[...] + bt_ref[...]).astype(o_ref.dtype)


def linear_add_ln(x, p, residual, gamma_p, beta_p, eps=1e-5,
                  out_dtype=jnp.bfloat16):
    """LayerNorm(residual + x @ w + b); requires the padded output width to fit
    a single lane tile (checked by the caller)."""
    M, K = x.shape
    Kp, Np = p["w"].shape
    N = p["n"]

    tm = min(_LIN_TM, _round_up(M, 8))
    tk = _pick_tile(Kp, _LIN_TK)
    Mp = _round_up(M, tm)

    xp = _pad2(x.astype(jnp.bfloat16), Mp, Kp)
    rp = _pad2(residual.astype(jnp.bfloat16), Mp, Np)

    out = pl.pallas_call(
        functools.partial(_matmul_add_ln_kernel, n_valid=N, n_padded=Np, eps=eps),
        out_shape=jax.ShapeDtypeStruct((Mp, Np), out_dtype),
        grid=(Mp // tm, Kp // tk),
        in_specs=[
            pl.BlockSpec((tm, tk), lambda i, k: (i, k)),
            pl.BlockSpec((tk, Np), lambda i, k: (k, 0)),
            pl.BlockSpec((1, Np), lambda i, k: (0, 0)),
            pl.BlockSpec((tm, Np), lambda i, k: (i, 0)),
            pl.BlockSpec((1, Np), lambda i, k: (0, 0)),
            pl.BlockSpec((1, Np), lambda i, k: (0, 0)),
        ],
        out_specs=pl.BlockSpec((tm, Np), lambda i, k: (i, 0)),
        scratch_shapes=[pltpu.VMEM((tm, Np), jnp.float32)],
        compiler_params=pltpu.CompilerParams(
            dimension_semantics=("parallel", "arbitrary"),
            vmem_limit_bytes=_VMEM_LIMIT),
    )(xp, p["w"], p["b"], rp, gamma_p, beta_p)
    return out[:M, :N]


def _add_ln_kernel(x_ref, y_ref, g_ref, b_ref, o_ref, *, eps):
    z = x_ref[...].astype(jnp.float32) + y_ref[...].astype(jnp.float32)
    mean = jnp.mean(z, axis=-1, keepdims=True)
    var = jnp.mean(jnp.square(z - mean), axis=-1, keepdims=True)  # biased (torch LN)
    zn = (z - mean) * jax.lax.rsqrt(var + eps)
    o_ref[...] = (zn * g_ref[...] + b_ref[...]).astype(o_ref.dtype)


def add_layernorm(x, y, gamma, beta, eps=1e-5, out_dtype=jnp.bfloat16, tm=512):
    """Fallback LayerNorm(x + y) over last dim, bf16 in / bf16 out, f32 stats."""
    M, D = x.shape
    tm = min(tm, _round_up(M, 8))
    Mp = _round_up(M, tm)
    xp = _pad2(x, Mp, D)
    yp = _pad2(y, Mp, D)
    out = pl.pallas_call(
        functools.partial(_add_ln_kernel, eps=eps),
        out_shape=jax.ShapeDtypeStruct((Mp, D), out_dtype),
        grid=(Mp // tm,),
        in_specs=[
            pl.BlockSpec((tm, D), lambda i: (i, 0)),
            pl.BlockSpec((tm, D), lambda i: (i, 0)),
            pl.BlockSpec((1, D), lambda i: (0, 0)),
            pl.BlockSpec((1, D), lambda i: (0, 0)),
        ],
        out_specs=pl.BlockSpec((tm, D), lambda i: (i, 0)),
        compiler_params=pltpu.CompilerParams(
            dimension_semantics=("parallel",),
            vmem_limit_bytes=_VMEM_LIMIT),
    )(xp, yp, gamma.astype(jnp.float32), beta.astype(jnp.float32))
    return out[:M]


def _attn_kernel(*refs, scale, has_bias):
    """One (batch, head) per grid cell; q/k/v arrive as (1, 1, L, Dh) blocks."""
    if has_bias:
        q_ref, k_ref, v_ref, bias_ref, o_ref = refs
    else:
        q_ref, k_ref, v_ref, o_ref = refs
        bias_ref = None

    q = q_ref[0, 0] * scale                # (Lq, Dh) bf16; 1/sqrt(Dh) folded into q
    k = k_ref[0, 0]                        # (Lk, Dh) bf16
    v = v_ref[0, 0]                        # (Lk, Dh) bf16
    s = jax.lax.dot_general(q, k, (((1,), (1,)), ((), ())),
                            preferred_element_type=jnp.float32)  # (Lq, Lk) f32
    if bias_ref is not None:
        s = s + bias_ref[...]
    m = jnp.max(s, axis=-1, keepdims=True)
    p = jnp.exp(s - m)
    denom = jnp.sum(p, axis=-1, keepdims=True)
    p = p * pl.reciprocal(denom, approx=True)                    # EUP, ~free
    o_ref[0, 0] = jnp.dot(p.astype(v.dtype), v,
                          preferred_element_type=jnp.float32).astype(o_ref.dtype)


def sdpa(q, k, v, bias=None, out_dtype=jnp.bfloat16):
    """q: (B, H, Lq, Dh), k/v: (B, H, Lk, Dh) bf16.  bias: optional (Lq, Lk) add-mask.
    Returns (B, H, Lq, Dh) in out_dtype."""
    # TODO(synk): add a KV-tile grid axis with online-softmax (flash-style) for
    # very long sequences on 64 MiB-VMEM parts (v7x).
    B, H, Lq, Dh = q.shape
    Lk = k.shape[2]
    scale = 1.0 / math.sqrt(Dh)
    has_bias = bias is not None

    in_specs = [
        pl.BlockSpec((1, 1, Lq, Dh), lambda b, h: (b, h, 0, 0)),
        pl.BlockSpec((1, 1, Lk, Dh), lambda b, h: (b, h, 0, 0)),
        pl.BlockSpec((1, 1, Lk, Dh), lambda b, h: (b, h, 0, 0)),
    ]
    args = [q, k, v]
    if has_bias:
        in_specs.append(pl.BlockSpec((Lq, Lk), lambda b, h: (0, 0)))
        args.append(bias.astype(jnp.float32))

    return pl.pallas_call(
        functools.partial(_attn_kernel, scale=scale, has_bias=has_bias),
        out_shape=jax.ShapeDtypeStruct((B, H, Lq, Dh), out_dtype),
        grid=(B, H),
        in_specs=in_specs,
        out_specs=pl.BlockSpec((1, 1, Lq, Dh), lambda b, h: (b, h, 0, 0)),
        compiler_params=pltpu.CompilerParams(
            dimension_semantics=("parallel", "parallel"),
            vmem_limit_bytes=_VMEM_LIMIT),
    )(*args)


# ----------------------------------------------------------------------------
# Model glue (parameter init + forward orchestration)
# ----------------------------------------------------------------------------
def multihead_attention(x_q, x_kv, p, nhead, attn_bias=None, self_attention=False):
    """QKV projection + per-(batch,head) SDPA.  Output projection + residual + LN
    are fused into the following linear_add_ln call.  Returns (B*Lq, D) bf16."""
    B, Lq, D = x_q.shape
    Lk = x_kv.shape[1]
    Dh = D // nhead
    xq2 = x_q.reshape(B * Lq, D)

    if self_attention:
        qkv = linear(xq2, p["in_proj"])                       # (B*Lq, 3D) bf16
        q, k, v = qkv[:, :D], qkv[:, D:2 * D], qkv[:, 2 * D:]
        Lk = Lq
    else:
        q = linear(xq2, p["q_proj"])                          # (B*Lq, D) bf16
        kv = linear(x_kv.reshape(B * Lk, D), p["kv_proj"])    # (B*Lk, 2D) bf16
        k, v = kv[:, :D], kv[:, D:]

    def to_heads(t, L):
        return t.reshape(B, L, nhead, Dh).transpose(0, 2, 1, 3)   # (B, H, L, Dh)

    o = sdpa(to_heads(q, Lq), to_heads(k, Lk), to_heads(v, Lk), bias=attn_bias)
    return o.transpose(0, 2, 1, 3).reshape(B * Lq, D)             # (B*Lq, D) bf16


def _proj_add_ln(y, proj_p, residual, gamma_p, beta_p):
    """LayerNorm(residual + y @ Wo + bo), fused when the output width fits one tile."""
    Np = proj_p["w"].shape[1]
    if Np <= 1024:
        return linear_add_ln(y, proj_p, residual, gamma_p, beta_p)
    z = linear(y, proj_p)                                      # fallback path
    D = proj_p["n"]
    return add_layernorm(residual, z, gamma_p[:, :D], beta_p[:, :D])


def decoder_layer(x, memory, lp, nhead, tgt_bias):
    """One nn.TransformerDecoderLayer (post-norm, ReLU activation, eval mode)."""
    B, Lt, D = x.shape
    x2 = x.reshape(B * Lt, D)

    # self-attention block
    sa = multihead_attention(x, x, lp["self_attn"], nhead,
                             attn_bias=tgt_bias, self_attention=True)
    x2 = _proj_add_ln(sa, lp["self_attn"]["out_proj"], x2, lp["ln1_g"], lp["ln1_b"])
    x = x2.reshape(B, Lt, D)

    # cross-attention block (memory)
    ca = multihead_attention(x, memory, lp["cross_attn"], nhead,
                             attn_bias=None, self_attention=False)
    x2 = _proj_add_ln(ca, lp["cross_attn"]["out_proj"], x2, lp["ln2_g"], lp["ln2_b"])
    x = x2.reshape(B, Lt, D)

    # feed-forward block
    h = linear(x2, lp["ff1"], activation="relu")               # bf16
    x2 = _proj_add_ln(h, lp["ff2"], x2, lp["ln3_g"], lp["ln3_b"])
    return x2.reshape(B, Lt, D)


def _make_linear_params(key, k_in, n_out, scale=0.02):
    """Weight pre-transposed to (K, N), pre-padded to 128 multiples, bf16."""
    Kp, Np = _round_up(k_in, 128), _round_up(n_out, 128)
    w = jax.random.normal(key, (k_in, n_out), jnp.float32) * scale
    return {
        "w": _pad2(w, Kp, Np).astype(jnp.bfloat16),
        "b": jnp.zeros((1, Np), jnp.float32),
        "k": k_in,
        "n": n_out,
    }


def init_params(key, vocab_size, d_model, nhead, num_layers, dim_ff):
    keys = iter(jax.random.split(key, 3 + num_layers * 7))
    Dp = _round_up(d_model, 128)

    def ln_pair():
        g = jnp.pad(jnp.ones((1, d_model), jnp.float32), ((0, 0), (0, Dp - d_model)))
        b = jnp.zeros((1, Dp), jnp.float32)
        return g, b

    params = {
        "embedding": jax.random.normal(next(keys), (vocab_size, d_model), jnp.float32),
        "pos_embedding": jax.random.normal(next(keys), (1000, d_model), jnp.float32),
        "out_proj": _make_linear_params(next(keys), d_model, vocab_size),
        "layers": [],
    }

    for _ in range(num_layers):
        ln1 = ln_pair(); ln2 = ln_pair(); ln3 = ln_pair()
        params["layers"].append({
            "self_attn": {
                "in_proj": _make_linear_params(next(keys), d_model, 3 * d_model),
                "out_proj": _make_linear_params(next(keys), d_model, d_model),
            },
            "cross_attn": {                      # q / kv halves pre-split at init
                "q_proj": _make_linear_params(next(keys), d_model, d_model),
                "kv_proj": _make_linear_params(next(keys), d_model, 2 * d_model),
                "out_proj": _make_linear_params(next(keys), d_model, d_model),
            },
            "ff1": _make_linear_params(next(keys), d_model, dim_ff),
            "ff2": _make_linear_params(next(keys), dim_ff, d_model),
            "ln1_g": ln1[0], "ln1_b": ln1[1],
            "ln2_g": ln2[0], "ln2_b": ln2[1],
            "ln3_g": ln3[0], "ln3_b": ln3[1],
        })
    return params


def comment_decoder_forward(params, tgt_tokens, memory, nhead, tgt_mask=None):
    """
    tgt_tokens: (B, tgt_len) int32
    memory:     (B, src_len, d_model) float32
    tgt_mask:   optional additive float mask (tgt_len, tgt_len), e.g. causal.
    Returns logits (B, tgt_len, vocab_size) in f32.
    # TODO(synk): tgt_key_padding_mask / memory_key_padding_mask (default None) not implemented.
    """
    B, Lt = tgt_tokens.shape
    D = memory.shape[-1]
    tok_emb = jnp.take(params["embedding"], tgt_tokens, axis=0)            # (B, Lt, D)
    positions = jnp.arange(Lt, dtype=jnp.int32)
    pos_emb = jnp.take(params["pos_embedding"], positions, axis=0)[None]   # (1, Lt, D)
    x = (tok_emb + pos_emb).astype(jnp.bfloat16)    # bf16 activations end-to-end
    memory = memory.astype(jnp.bfloat16)

    for lp in params["layers"]:
        x = decoder_layer(x, memory, lp, nhead, tgt_bias=tgt_mask)

    logits = linear(x.reshape(B * Lt, D), params["out_proj"],
                    out_dtype=jnp.float32)          # only the logits stay f32
    return logits.reshape(B, Lt, params["out_proj"]["n"])


# ----------------------------------------------------------------------------
if __name__ == "__main__":
    # small, self-consistent shapes
    VOCAB, D_MODEL, NHEAD, NUM_LAYERS, DIM_FF = 64, 32, 4, 2, 64
    B, TGT_LEN, SRC_LEN = 2, 8, 8

    key = jax.random.PRNGKey(0)
    k_params, k_tok, k_mem = jax.random.split(key, 3)

    params = init_params(k_params, VOCAB, D_MODEL, NHEAD, NUM_LAYERS, DIM_FF)
    tgt_tokens = jax.random.randint(k_tok, (B, TGT_LEN), 0, VOCAB, dtype=jnp.int32)
    memory = jax.random.normal(k_mem, (B, SRC_LEN, D_MODEL), jnp.float32)

    # forward with default (None) masks, exactly like the PyTorch module defaults
    logits = comment_decoder_forward(params, tgt_tokens, memory, NHEAD, tgt_mask=None)
    logits = jax.block_until_ready(logits)

    assert logits.shape == (B, TGT_LEN, VOCAB)
    assert bool(jnp.all(jnp.isfinite(logits)))
    print("KERNEL_OK")
</pallas_src>

<mosaic_0001>
module attributes {stable_mosaic.version = 11 : i64} {
  func.func @_matmul_kernel(%arg0: i32, %arg1: i32, %arg2: i32, %arg3: memref<16x128xbf16, #tpu.memory_space<vmem>>, %arg4: memref<128x128xbf16, #tpu.memory_space<vmem>>, %arg5: memref<1x128xf32, #tpu.memory_space<vmem>>, %arg6: memref<16x128xbf16, #tpu.memory_space<vmem>>, %arg7: memref<16x128xf32, #tpu.memory_space<vmem>>) attributes {dimension_semantics = [#tpu.dimension_semantics<parallel>, #tpu.dimension_semantics<parallel>, #tpu.dimension_semantics<arbitrary>], iteration_bounds = array<i64: 1, 1, 1>, scalar_prefetch = 0 : i64, scratch_operands = 1 : i64, tpu.core_type = #tpu.core_type<tc>, window_params = [{transform_indices = @transform_0, window_bounds = array<i64: 16, 128>}, {transform_indices = @transform_1, window_bounds = array<i64: 128, 128>}, {transform_indices = @transform_2, window_bounds = array<i64: 1, 128>}, {transform_indices = @transform_3, window_bounds = array<i64: 16, 128>}]} {
    %c0_i32 = arith.constant 0 : i32
    %0 = arith.cmpi eq, %arg2, %c0_i32 : i32
    %1 = arith.extui %0 : i1 to i32
    %c0_i32_0 = arith.constant 0 : i32
    %2 = arith.cmpi ne, %1, %c0_i32_0 : i32
    scf.if %2 {
      %cst_10 = arith.constant 0.000000e+00 : f32
      %12 = vector.broadcast %cst_10 : f32 to vector<16x128xf32>
      %c0_11 = arith.constant 0 : index
      %c0_12 = arith.constant 0 : index
      %13 = vector.load %arg7[%c0_11, %c0_12] : memref<16x128xf32, #tpu.memory_space<vmem>>, vector<16x128xf32>
      tpu.vector_store %arg7[%c0_11, %c0_12], %12 {strides = array<i32>} : memref<16x128xf32, #tpu.memory_space<vmem>>, vector<16x128xf32>,
    } else {
    }
    %c0 = arith.constant 0 : index
    %c0_1 = arith.constant 0 : index
    %3 = vector.load %arg7[%c0, %c0_1] : memref<16x128xf32, #tpu.memory_space<vmem>>, vector<16x128xf32>
    %c0_2 = arith.constant 0 : index
    %c0_3 = arith.constant 0 : index
    %4 = vector.load %arg3[%c0_2, %c0_3] : memref<16x128xbf16, #tpu.memory_space<vmem>>, vector<16x128xbf16>
    %c0_4 = arith.constant 0 : index
    %c0_5 = arith.constant 0 : index
    %5 = vector.load %arg4[%c0_4, %c0_5] : memref<128x128xbf16, #tpu.memory_space<vmem>>, vector<128x128xbf16>
    %cst = arith.constant dense<0.000000e+00> : vector<16x128xf32>
    %6 = tpu.matmul %4, %5, %cst {dimension_numbers = #tpu.dot_dimension_numbers<[1], [0], [0], [1], [0, 0, 1, 1], [], []>} : vector<16x128xbf16>, vector<128x128xbf16>, vector<16x128xf32> -> vector<16x128xf32>
    %7 = arith.addf %3, %6 : vector<16x128xf32>
    %c0_6 = arith.constant 0 : index
    %c0_7 = arith.constant 0 : index
    %8 = vector.load %arg7[%c0_6, %c0_7] : memref<16x128xf32, #tpu.memory_space<vmem>>, vector<16x128xf32>
    tpu.vector_store %arg7[%c0_6, %c0_7], %7 {strides = array<i32>} : memref<16x128xf32, #tpu.memory_space<vmem>>, vector<16x128xf32>,
    %c0_i32_8 = arith.constant 0 : i32
    %9 = arith.cmpi eq, %arg2, %c0_i32_8 : i32
    %10 = arith.extui %9 : i1 to i32
    %c0_i32_9 = arith.constant 0 : i32
    %11 = arith.cmpi ne, %10, %c0_i32_9 : i32
    scf.if %11 {
      %c0_10 = arith.constant 0 : index
      %c0_11 = arith.constant 0 : index
      %12 = vector.load %arg7[%c0_10, %c0_11] : memref<16x128xf32, #tpu.memory_space<vmem>>, vector<16x128xf32>
      %c0_12 = arith.constant 0 : index
      %c0_13 = arith.constant 0 : index
      %13 = vector.load %arg5[%c0_12, %c0_13] : memref<1x128xf32, #tpu.memory_space<vmem>>, vector<1x128xf32>
      %14 = vector.broadcast %13 : vector<1x128xf32> to vector<16x128xf32>
      %15 = arith.addf %12, %14 : vector<16x128xf32>
      %16 = arith.truncf %15 : vector<16x128xf32> to vector<16x128xbf16>
      %c0_14 = arith.constant 0 : index
      %c0_15 = arith.constant 0 : index
      %17 = vector.load %arg6[%c0_14, %c0_15] : memref<16x128xbf16, #tpu.memory_space<vmem>>, vector<16x128xbf16>
      tpu.vector_store %arg6[%c0_14, %c0_15], %16 {strides = array<i32>} : memref<16x128xbf16, #tpu.memory_space<vmem>>, vector<16x128xbf16>,
    } else {
    }
    return
  }
  func.func @transform_0(%arg0: i32, %arg1: i32, %arg2: i32) -> (i32, i32) {
    %c0_i32 = arith.constant 0 : i32
    return %arg0, %arg2 : i32, i32
  }
  func.func @transform_1(%arg0: i32, %arg1: i32, %arg2: i32) -> (i32, i32) {
    %c0_i32 = arith.constant 0 : i32
    return %arg2, %arg1 : i32, i32
  }
  func.func @transform_2(%arg0: i32, %arg1: i32, %arg2: i32) -> (i32, i32) {
    %c0_i32 = arith.constant 0 : i32
    %c0_i32_0 = arith.constant 0 : i32
    return %c0_i32, %arg1 : i32, i32
  }
  func.func @transform_3(%arg0: i32, %arg1: i32, %arg2: i32) -> (i32, i32) {
    %c0_i32 = arith.constant 0 : i32
    return %arg0, %arg1 : i32, i32
  }
}

</mosaic_0001>

<bundles_post_ra>
// kernel: tpu_custom_call.1
= control target key start
LH: loop header
LB: loop body
LE: loop exit
PB: predicated region body
PF: predicated region fallthrough
CT: control target
= control target key end

     0   :  { %8 = vsyncpa [#allocation4], 0  ;;  %s422_s0 = inlined_call_operand.hbm [shape: bf16[16,128], index: 0, kind: input, shape index: {}]   ;;  %s423_s1 = inlined_call_operand.hbm [shape: bf16[128,128], index: 1, kind: input, shape index: {}]   ;;  %s424_s2 = inlined_call_operand.vmem [shape: f32[1,128], index: 2, kind: input, shape index: {}]   ;;  %s425_s3 = inlined_call_operand.hbm [shape: bf16[16,128], index: 3, kind: output, shape index: {}]  }
   0x1   :  { %9 = vsyncpa [#allocation7], 0 }
   0x2   :  { %10 = vsyncpa [#allocation5], 0  ;;  %s347_s12 = smov [#allocation3]   ;;  %s275_s16 = scalar_lea.hbm %s422_s0, 128 }
   0x3   :  { %s16_s13 = sshll.u32 %s347_s12, 4  ;;  %p276_p0 = scmp.ne.s32.totalorder %s422_s0, %s275_s16  ;;  %s17_s13 = int_to_ptr.vmem [resolvable:$true] %s16_s13 }
   0x4   :  { %p279_p1 = scmp.lt.u32.totalorder %s275_s16, %s422_s0 }
   0x6   :  { %p281_p2 = pnand %p279_p1, %p276_p0 }
   0x8   :  { %284 = shalt.err (!%p281_p2)
}
   0x9   :  { %s285_s21 = scalar_lea.vmem %s17_s13, 128  ;;  %p290_p4 = scmp.lt.s32.totalorder %s17_s13, %s17_s13 }
   0xa   :  { %p286_p3 = scmp.ne.s32.totalorder %s17_s13, %s285_s21  ;;  %p291_p5 = scmp.lt.s32.totalorder %s285_s21, %s285_s21 }
   0xc   :  { %p292_p6 = por %p291_p5, %p290_p4 }
   0xe   :  { %p293_p7 = pnand %p292_p6, %p286_p3 }
  0x10   :  { %296 = shalt.err (!%p293_p7)
}
  0x11   :  { %s348_s22 = smov 64   ;;  %s349_s23 = smov 4  }
  0x12   :  { %22 = dma.hbm_to_vmem [thread:$0]  %s422_s0, 128, %s17_s13, [#allocation4], %s348_s22, %s348_s22, %s349_s23  }
  0x13   :  { %s350_s26 = smov [#allocation6]   ;;  %s297_s30 = scalar_lea.hbm %s423_s1, 1024 }
  0x14   :  { %s28_s27 = sshll.u32 %s350_s26, 4  ;;  %p298_p8 = scmp.ne.s32.totalorder %s423_s1, %s297_s30  ;;  %s29_s27 = int_to_ptr.vmem [resolvable:$true] %s28_s27 }
  0x15   :  { %p301_p9 = scmp.lt.u32.totalorder %s297_s30, %s423_s1 }
  0x17   :  { %p303_p10 = pnand %p301_p9, %p298_p8 }
  0x19   :  { %306 = shalt.err (!%p303_p10)
}
  0x1a   :  { %s307_s8 = scalar_lea.vmem %s29_s27, 1024  ;;  %p312_p12 = scmp.lt.s32.totalorder %s29_s27, %s29_s27 }
  0x1b   :  { %p308_p11 = scmp.ne.s32.totalorder %s29_s27, %s307_s8  ;;  %p313_p13 = scmp.lt.s32.totalorder %s307_s8, %s307_s8 }
  0x1d   :  { %p314_p0 = por %p313_p13, %p312_p12 }
  0x1f   :  { %p315_p1 = pnand %p314_p0, %p308_p11 }
  0x21   :  { %318 = shalt.err (!%p315_p1)
}
  0x22   :  { %34 = dma.hbm_to_vmem [thread:$0]  %s423_s1, 1024, %s29_s27, [#allocation7], %s348_s22, %s348_s22, %s349_s23  }
  0x23   :  { %341 = dma.done.wait [#allocation4], 128  }
  0x24   :  { %342 = vsyncadd [#allocation4], 4294967168 }
  0x25   :  { %343 = dma.done.wait [#allocation7], 1024  }
  0x26   :  { %344 = vsyncadd [#allocation7], 4294966272  ;;  %v351_v0 = vmov 0.0   ;;  %vm352_vm0 = vmmov 0   ;;  %v266_v1 = vld [vmem:[#allocation6] sm:$0xff]   ;;  %v267_v2 = vld [vmem:[#allocation6 + $0x8] sm:$0xff]  }
  0x27   :  { %239 = vmatprep.subr.bf16.mxu0 %v351_v0  ;;  %255 = vmatprep.mubr.msk.bf16.mxu0 %vm352_vm0, %v351_v0  ;;  %v268_v3 = vld [vmem:[#allocation6 + $0x10] sm:$0xff]   ;;  %v269_v4 = vld [vmem:[#allocation6 + $0x18] sm:$0xff]   ;;  %v270_v5 = vld [vmem:[#allocation6 + $0x20] sm:$0xff]   ;;  %s353_s11 = smov [#allocation8]  }
  0x28   :  { %240 = vmatpush3.bf16.msra.mxu0 %v266_v1  ;;  %v271_v6 = vld [vmem:[#allocation6 + $0x28] sm:$0xff]   ;;  %v272_v7 = vld [vmem:[#allocation6 + $0x30] sm:$0xff]   ;;  %v273_v8 = vld [vmem:[#allocation6 + $0x38] sm:$0xff]   ;;  %s198_s12 = sshll.u32 %s353_s11, 4  ;;  %s199_s12 = int_to_ptr.vmem [resolvable:$true] %s198_s12 }
  0x29   :  { %241 = vmatprep.subr.bf16.mxu0 %v351_v0  ;;  %v274_v9 = vld [vmem:[#allocation3] sm:$0xff]   ;;  %s319_s13 = scalar_lea.vmem %s199_s12, 128  ;;  %p324_p3 = scmp.lt.s32.totalorder %s199_s12, %s199_s12 }
  0x2a   :  { %v220_v11 = vld [vmem:[%s424_s2] ss:$0 sm:$0xff]  ;;  %p320_p2 = scmp.ne.s32.totalorder %s199_s12, %s319_s13  ;;  %p325_p4 = scmp.lt.s32.totalorder %s319_s13, %s319_s13 }
  0x2c   :  { %242 = vmatpush3.bf16.msra.mxu0 %v267_v2  ;;  %p326_p5 = por %p325_p4, %p324_p3 }
  0x2d   :  { %243 = vmatprep.subr.bf16.mxu0 %v351_v0 }
  0x2e   :  { %p327_p6 = pnand %p326_p5, %p320_p2 }
  0x30   :  { %244 = vmatpush3.bf16.msra.mxu0 %v268_v3 }
  0x31   :  { %245 = vmatprep.subr.bf16.mxu0 %v351_v0 }
  0x34   :  { %246 = vmatpush3.bf16.msra.mxu0 %v269_v4 }
  0x35   :  { %247 = vmatprep.subr.bf16.mxu0 %v351_v0 }
  0x38   :  { %248 = vmatpush3.bf16.msra.mxu0 %v270_v5 }
  0x39   :  { %249 = vmatprep.subr.bf16.mxu0 %v351_v0 }
  0x3c   :  { %250 = vmatpush3.bf16.msra.mxu0 %v271_v6 }
  0x3d   :  { %251 = vmatprep.subr.bf16.mxu0 %v351_v0 }
  0x40   :  { %252 = vmatpush3.bf16.msra.mxu0 %v272_v7 }
  0x41   :  { %253 = vmatprep.subr.bf16.mxu0 %v351_v0 }
  0x44   :  { %254 = vmatpush3.bf16.msra.mxu0 %v273_v8 }
  0x47   :  { %256 = vmatmul.mubr.bf16.vlgmr.msra.gmra.mrb[0].mxu0 %v274_v9 }
 0x11a   :  { %v158_v10 = vpop.f32.mrb[0].mxu0 }
 0x11b   :  { %v257_v12 = vpop.f32.mrb[1].mxu0  ;;  %v181_v14 = vadd.f32 %v220_v11, %v158_v10 }
 0x11c   :  { %v161_v13 = vpop.f32.mrb[2].mxu0 }
 0x11d   :  { %v182_v15 = vadd.f32 %v220_v11, %v161_v13  ;;  %v258_v16 = vpop.f32.mrb[3].mxu0 }
 0x11f   :  { %v228_v17 = vpack.c.bf16 %v182_v15, %v181_v14 }
 0x121   :  { %229 = vst [vmem:[#allocation8] sm:$0xff] %v228_v17  }
 0x122   :  { %330 = shalt.err (!%p327_p6)
}
 0x123   :  { %s331_s2 = scalar_lea.hbm %s425_s3, 128 }
 0x124   :  { %p332_p7 = scmp.ne.s32.totalorder %s425_s3, %s331_s2  ;;  %p335_p8 = scmp.lt.u32.totalorder %s331_s2, %s425_s3 }
 0x126   :  { %p337_p9 = pnand %p335_p8, %p332_p7 }
 0x128   :  { %340 = shalt.err (!%p337_p9)
}
 0x129   :  { %204 = dma.vmem_to_hbm [thread:$0]  %s199_s12, 128, %s425_s3, [#allocation5], %s348_s22, %s348_s22, %s349_s23  }
 0x12a   :  { %345 = dma.done.wait [#allocation5], 128  }
 0x12b   :  { %346 = vsyncadd [#allocation5], 4294967168 }
 0x12c   :  { %208 = vsyncpa [#allocation4], 1 }
 0x12d   :  { %209 = vsyncpa [#allocation7], 1 }
 0x12e   :  { %210 = vsyncpa [#allocation5], 1 }

</bundles_post_ra>
